<compile_context>
chip_gen: v7x
topology: tpu7x:2x2x1
jax: 0.10.0
libtpu: 0.0.40
codegen_flags: <defaults>
</compile_context>

<pallas_src>
import functools

import jax
import jax.numpy as jnp
from jax.experimental import pallas as pl
from jax.experimental.pallas import tpu as pltpu


# ----------------------------------------------------------------------------
# Pallas kernel: fused (linear learner) + threshold/where with uniform noise
# ----------------------------------------------------------------------------
def _uniform_from_counter(seed_u32, tile_idx, shape):
    """Uniform [0,1) noise from a per-element counter hash (plain VPU int ops)."""
    tm, hidden = shape
    row = jax.lax.broadcasted_iota(jnp.int32, shape, 0)
    col = jax.lax.broadcasted_iota(jnp.int32, shape, 1)
    # Globally-unique per-element counter -> no correlated noise across tiles.
    gidx = (tile_idx * tm + row) * hidden + col
    h = gidx.astype(jnp.uint32) + seed_u32
    # splitmix32-style finalizer; hides under MXU time.
    h = (h ^ (h >> 16)) * jnp.uint32(0x7FEB352D)
    h = (h ^ (h >> 15)) * jnp.uint32(0x846CA68B)
    h = h ^ (h >> 16)
    bits24 = (h >> 8).astype(jnp.int32)            # in [0, 2^24)
    return bits24.astype(jnp.float32) * (1.0 / float(1 << 24))


def rerank_kernel(seed_ref, x_ref, w_ref, b_ref, o_ref, *, threshold):
    # learner(X): dense layer on the MXU, f32 accumulation.
    result = jnp.dot(x_ref[...], w_ref[...],
                     preferred_element_type=jnp.float32) + b_ref[...]

    # T.rand(X.shape): decorrelated per-tile uniform noise.
    seed_u32 = seed_ref[0].astype(jnp.uint32)
    rand_u = _uniform_from_counter(seed_u32, pl.program_id(0), o_ref.shape)

    # T.where(result > threshold, result + 10.0, rand)  -- f32 epilogue.
    cond = result > threshold
    o_ref[...] = jnp.where(cond, result + 10.0, rand_u).astype(o_ref.dtype)


def rand_rerank_forward(x, w, b, seed, threshold, *, tile_m=None):
    batch, hidden = x.shape

    if tile_m is None:
        # Big lane/sublane-dense tiles; cap at 512 rows (mem-bound sweet spot).
        tile_m = min(512, max(8, pl.cdiv(batch, 8) * 8))
    tile_m = max(8, (tile_m // 8) * 8)

    padded = pl.cdiv(batch, tile_m) * tile_m
    x_p = jnp.pad(x, ((0, padded - batch), (0, 0))) if padded != batch else x
    grid = (padded // tile_m,)

    kernel = functools.partial(rerank_kernel, threshold=float(threshold))

    # VMEM budget: resident W + bias + double-buffered X/out tiles + headroom.
    w_bytes = hidden * hidden * w.dtype.itemsize
    tile_bytes = tile_m * hidden * 4
    vmem_needed = w_bytes + hidden * 4 + 4 * tile_bytes + (2 << 20)
    vmem_limit = int(min(max(vmem_needed, 32 * 1024 * 1024), 120 * 1024 * 1024))

    cost = pl.CostEstimate(
        flops=2 * padded * hidden * hidden,
        transcendentals=0,
        bytes_accessed=4 * (2 * padded * hidden + hidden * hidden + hidden),
    )

    out = pl.pallas_call(
        kernel,
        out_shape=jax.ShapeDtypeStruct((padded, hidden), jnp.float32),
        grid_spec=pltpu.PrefetchScalarGridSpec(
            num_scalar_prefetch=1,                    # seed lands in SMEM
            grid=grid,
            in_specs=[
                pl.BlockSpec((tile_m, hidden), lambda i, seed_ref: (i, 0)),  # X tile
                pl.BlockSpec((hidden, hidden), lambda i, seed_ref: (0, 0)),  # W resident
                pl.BlockSpec((1, hidden),      lambda i, seed_ref: (0, 0)),  # bias resident
            ],
            out_specs=pl.BlockSpec((tile_m, hidden), lambda i, seed_ref: (i, 0)),
        ),
        compiler_params=pltpu.CompilerParams(
            dimension_semantics=("parallel",),        # megacore-shardable on v7x
            vmem_limit_bytes=vmem_limit,
        ),
        cost_estimate=cost,
    )(seed, x_p, w, b)

    return out[:batch] if padded != batch else out


# ----------------------------------------------------------------------------
# Plain-JAX glue mirroring rand_rerank.__init__ (unused by forward()).
# TODO(synk): sparse x_items path (torch.sparse.sum) not translated; dense only.
# ----------------------------------------------------------------------------
def rand_rerank_init_state(x_items):
    counts = jnp.sum(x_items, axis=1)                      # T.sum(x_items, dim=1)
    indices = jnp.argsort(counts)                          # ascending sort indices
    low_rank = 1.0 - indices.astype(jnp.float32) / counts.shape[0]
    return counts, indices, low_rank


if __name__ == "__main__":
    key = jax.random.PRNGKey(0)
    k_x, k_w, k_b, k_items = jax.random.split(key, 4)

    batch, hidden = 128, 128      # small, (8,128)-tile friendly
    n_items, n_feat = 16, 8

    # Deterministic learner parameters (synthetic Linear(hidden, hidden)).
    x = jax.random.normal(k_x, (batch, hidden), dtype=jnp.float32)
    w = jax.random.normal(k_w, (hidden, hidden), dtype=jnp.float32) * (1.0 / hidden ** 0.5)
    b = jax.random.normal(k_b, (1, hidden), dtype=jnp.float32) * 0.01

    # Module __init__ inputs.
    x_items = jax.random.uniform(k_items, (n_items, n_feat), dtype=jnp.float32)
    counts, indices, low_rank = rand_rerank_init_state(x_items)

    threshold = 0.5
    seed = jnp.array([0], dtype=jnp.int32)

    # tile_m=32 exercises a multi-step grid on this small example.
    out = rand_rerank_forward(x, w, b, seed, threshold, tile_m=32)
    out = jax.block_until_ready(out)

    assert out.shape == x.shape and out.dtype == jnp.float32

    # Light correctness check against a plain-JAX learner reference:
    # taken branch => matches result+10; else branch => uniform in [0, 1).
    result_ref = jnp.dot(x, w, preferred_element_type=jnp.float32) + b
    took_result = out > 5.0   # result+10 > 10.5 on that branch, rand < 1 otherwise
    assert jnp.allclose(jnp.where(took_result, out, 0.0),
                        jnp.where(took_result, result_ref + 10.0, 0.0),
                        rtol=1e-2, atol=1e-2)
    rand_part = jnp.where(took_result, 0.5, out)
    assert bool(jnp.all((rand_part >= 0.0) & (rand_part < 1.0)))

    print("KERNEL_OK")
</pallas_src>

<mosaic_0001>
module attributes {stable_mosaic.version = 11 : i64} {
  func.func @rerank_kernel(%arg0: i32, %arg1: memref<1xi32, #tpu.memory_space<smem>>, %arg2: memref<32x128xf32, #tpu.memory_space<vmem>>, %arg3: memref<128x128xf32, #tpu.memory_space<vmem>>, %arg4: memref<1x128xf32, #tpu.memory_space<vmem>>, %arg5: memref<32x128xf32, #tpu.memory_space<vmem>>) attributes {dimension_semantics = [#tpu.dimension_semantics<parallel>], iteration_bounds = array<i64: 4>, scalar_prefetch = 1 : i64, scratch_operands = 0 : i64, tpu.core_type = #tpu.core_type<tc>, window_params = [{transform_indices = @transform_0, window_bounds = array<i64: 32, 128>}, {pipeline_mode = #tpu.pipeline_mode<synchronous>, transform_indices = @transform_1, window_bounds = array<i64: 128, 128>}, {pipeline_mode = #tpu.pipeline_mode<synchronous>, transform_indices = @transform_2, window_bounds = array<i64: 1, 128>}, {transform_indices = @transform_3, window_bounds = array<i64: 32, 128>}]} {
    %c0 = arith.constant 0 : index
    %c0_0 = arith.constant 0 : index
    %0 = vector.load %arg2[%c0, %c0_0] : memref<32x128xf32, #tpu.memory_space<vmem>>, vector<32x128xf32>
    %c0_1 = arith.constant 0 : index
    %c0_2 = arith.constant 0 : index
    %1 = vector.load %arg3[%c0_1, %c0_2] : memref<128x128xf32, #tpu.memory_space<vmem>>, vector<128x128xf32>
    %cst = arith.constant dense<0.000000e+00> : vector<32x128xf32>
    %2 = tpu.matmul %0, %1, %cst {dimension_numbers = #tpu.dot_dimension_numbers<[1], [0], [0], [1], [0, 0, 1, 1], [], []>} : vector<32x128xf32>, vector<128x128xf32>, vector<32x128xf32> -> vector<32x128xf32>
    %c0_3 = arith.constant 0 : index
    %c0_4 = arith.constant 0 : index
    %3 = vector.load %arg4[%c0_3, %c0_4] : memref<1x128xf32, #tpu.memory_space<vmem>>, vector<1x128xf32>
    %4 = vector.broadcast %3 : vector<1x128xf32> to vector<32x128xf32>
    %5 = arith.addf %2, %4 : vector<32x128xf32>
    %c0_5 = arith.constant 0 : index
    %6 = memref.load %arg1[%c0_5] : memref<1xi32, #tpu.memory_space<smem>>
    %7 = tpu.iota {dimensions = array<i32: 0>} : vector<32x128xi32>
    %8 = tpu.iota {dimensions = array<i32: 1>} : vector<32x128xi32>
    %c32_i32 = arith.constant 32 : i32
    %9 = arith.muli %arg0, %c32_i32 : i32
    %10 = vector.broadcast %9 : i32 to vector<32x128xi32>
    %11 = arith.addi %10, %7 : vector<32x128xi32>
    %c128_i32 = arith.constant 128 : i32
    %12 = vector.broadcast %c128_i32 : i32 to vector<32x128xi32>
    %13 = arith.muli %11, %12 : vector<32x128xi32>
    %14 = arith.addi %13, %8 : vector<32x128xi32>
    %15 = vector.broadcast %6 : i32 to vector<32x128xi32>
    %16 = arith.addi %14, %15 : vector<32x128xi32>
    %c16_i32 = arith.constant 16 : i32
    %17 = vector.broadcast %c16_i32 : i32 to vector<32x128xi32>
    %18 = arith.shrui %16, %17 : vector<32x128xi32>
    %19 = arith.xori %16, %18 : vector<32x128xi32>
    %c2146121005_i32 = arith.constant 2146121005 : i32
    %20 = vector.broadcast %c2146121005_i32 : i32 to vector<32x128xi32>
    %21 = arith.muli %19, %20 : vector<32x128xi32>
    %c15_i32 = arith.constant 15 : i32
    %22 = vector.broadcast %c15_i32 : i32 to vector<32x128xi32>
    %23 = arith.shrui %21, %22 : vector<32x128xi32>
    %24 = arith.xori %21, %23 : vector<32x128xi32>
    %c-2073254261_i32 = arith.constant -2073254261 : i32
    %25 = vector.broadcast %c-2073254261_i32 : i32 to vector<32x128xi32>
    %26 = arith.muli %24, %25 : vector<32x128xi32>
    %c16_i32_6 = arith.constant 16 : i32
    %27 = vector.broadcast %c16_i32_6 : i32 to vector<32x128xi32>
    %28 = arith.shrui %26, %27 : vector<32x128xi32>
    %29 = arith.xori %26, %28 : vector<32x128xi32>
    %c8_i32 = arith.constant 8 : i32
    %30 = vector.broadcast %c8_i32 : i32 to vector<32x128xi32>
    %31 = arith.shrui %29, %30 : vector<32x128xi32>
    %32 = arith.sitofp %31 : vector<32x128xi32> to vector<32x128xf32>
    %cst_7 = arith.constant 5.96046448E-8 : f32
    %33 = vector.broadcast %cst_7 : f32 to vector<32x128xf32>
    %34 = arith.mulf %32, %33 : vector<32x128xf32>
    %cst_8 = arith.constant 5.000000e-01 : f32
    %35 = vector.broadcast %cst_8 : f32 to vector<32x128xf32>
    %36 = arith.cmpf ogt, %5, %35 : vector<32x128xf32>
    %cst_9 = arith.constant 1.000000e+01 : f32
    %37 = vector.broadcast %cst_9 : f32 to vector<32x128xf32>
    %38 = arith.addf %5, %37 : vector<32x128xf32>
    %39 = arith.select %36, %38, %34 : vector<32x128xi1>, vector<32x128xf32>
    %c0_10 = arith.constant 0 : index
    %c0_11 = arith.constant 0 : index
    %40 = vector.load %arg5[%c0_10, %c0_11] : memref<32x128xf32, #tpu.memory_space<vmem>>, vector<32x128xf32>
    tpu.vector_store %arg5[%c0_10, %c0_11], %39 {strides = array<i32>} : memref<32x128xf32, #tpu.memory_space<vmem>>, vector<32x128xf32>,
    return
  }
  func.func @transform_0(%arg0: i32, %arg1: memref<1xi32, #tpu.memory_space<smem>>) -> (i32, i32) {
    %c0_i32 = arith.constant 0 : i32
    %c0_i32_0 = arith.constant 0 : i32
    return %arg0, %c0_i32 : i32, i32
  }
  func.func @transform_1(%arg0: i32, %arg1: memref<1xi32, #tpu.memory_space<smem>>) -> (i32, i32) {
    %c0_i32 = arith.constant 0 : i32
    %c0_i32_0 = arith.constant 0 : i32
    %c0_i32_1 = arith.constant 0 : i32
    return %c0_i32, %c0_i32_0 : i32, i32
  }
  func.func @transform_2(%arg0: i32, %arg1: memref<1xi32, #tpu.memory_space<smem>>) -> (i32, i32) {
    %c0_i32 = arith.constant 0 : i32
    %c0_i32_0 = arith.constant 0 : i32
    %c0_i32_1 = arith.constant 0 : i32
    return %c0_i32, %c0_i32_0 : i32, i32
  }
  func.func @transform_3(%arg0: i32, %arg1: memref<1xi32, #tpu.memory_space<smem>>) -> (i32, i32) {
    %c0_i32 = arith.constant 0 : i32
    %c0_i32_0 = arith.constant 0 : i32
    return %arg0, %c0_i32 : i32, i32
  }
}

</mosaic_0001>

<bundles_post_ra>
// kernel: tpu_custom_call.1
= control target key start
LH: loop header
LB: loop body
LE: loop exit
PB: predicated region body
PF: predicated region fallthrough
CT: control target
= control target key end

     0   :  { %s1075_s0 = inlined_call_operand.<no memory space> [shape: s32[1], index: 0, kind: input, shape index: {}]   ;;  %s1076_s1 = inlined_call_operand.hbm [shape: f32[128,128], index: 1, kind: input, shape index: {}]   ;;  %s1077_s2 = inlined_call_operand.hbm [shape: f32[128,128], index: 2, kind: input, shape index: {}]   ;;  %s1078_s3 = inlined_call_operand.vmem [shape: f32[1,128], index: 3, kind: input, shape index: {}]   ;;  %s1079_s4 = inlined_call_operand.hbm [shape: f32[128,128], index: 4, kind: output, shape index: {}]  }
   0x1   :  { %9 = sst [smem:[#allocation3]] %s1075_s0 }
   0x2   :  { %10 = vsyncpa [#allocation5], 0 }
   0x3   :  { %12 = vsyncpa [#allocation5 + $0x1], 0 }
   0x4   :  { %13 = vsyncpa [#allocation8], 0 }
   0x5   :  { %14 = vsyncpa [#allocation6], 0 }
   0x6   :  { %16 = vsyncpa [#allocation6 + $0x1], 0  ;;  %s856_s17 = smov 0   ;;  %s858_s18 = smov 0  }
   0x7   :  { %s860_s19 = smov 0   ;;  %s862_s20 = smov 0  }
   0x8 LB: > { %s877_s0 = sadd.s32 4294967295, %s819_s20   ;;  %s504_s21 = sadd.s32 4294967294, %s819_s20   ;;  %s819_s20 = sphi %s862_s20, %s1098_s20   ;;  %s815_s19 = sphi %s860_s19, %s1097_s19   ;;  %s811_s18 = sphi %s858_s18, %s1096_s18   ;;  %s807_s17 = sphi %s856_s17, %s1095_s17  }
   0x9   : > { %p42_p0 = scmp.ne.s32.totalorder %s811_s18, %s807_s17  ;;  %p1080_p1 = scmp.eq.s32.totalorder %s877_s0, 0 }
   0xa   : > { %p114_p3 = scmp.eq.s32.totalorder %s504_s21, 3  ;;  %p505_p5 = scmp.ge.s32.totalorder %s819_s20, 1 }
   0xb   : > { %p886_p4 = por %p1080_p1, %p42_p0  ;;  %p121_p7 = scmp.lt.s32.totalorder %s819_s20, 5 }
   0xc   : > { %p891_p6 = por %p114_p3, %p42_p0  ;;  %s821_s25 = smov [#allocation7]  }
   0xd   : > { %s1083_s22 = scalar_select %p886_p4, 1, 0 }
   0xe   : > { %s1084_s23 = scalar_select %p891_p6, 1, 0 }
   0xf   : > { %p896_p8 = pnand %p505_p5, %p121_p7  ;;  %s133_s26 = sshll.u32 %s821_s25, 4  ;;  %s134_s26 = int_to_ptr.vmem [resolvable:$true] %s133_s26 }
  0x10   : > { %s909_s28 = sadd.s32 1, %s819_s20   ;;  %s29_s29 = sadd.s32 1, %s815_s19 }
  0x11   : > { %s1085_s24 = scalar_select %p896_p8, 1, 0 }
  0x12   : > { %p638_p9 = pneg %p896_p8  ;;  %s26_s30 = ssub.s32 %s819_s20, %s909_s28 }
  0x13   : > { %s691_s7 = scalar_lea.hbm %s1077_s2, 2048 }
  0x14   : > { %p904_p10 = pnand %p638_p9, %p1080_p1  ;;  %p692_p11 = scmp.ne.s32.totalorder %s1077_s2, %s691_s7 }
  0x15   : > { %p698_p3 = scmp.lt.u32.totalorder %s691_s7, %s1077_s2 }
  0x16   : > { %p693_p12 = pneg %p904_p10 }
  0x18   : > { %p694_p13 = pnand %p693_p12, %p692_p11 }
  0x1a   : > { %p695_p0 = pneg %p694_p13 }
  0x1c   : > { %p700_p5 = pnand %p698_p3, %p695_p0 }
  0x1e   : > { %703 = shalt.err (!%p700_p5)
}
  0x1f   : > { %s704_s12 = scalar_lea.vmem %s134_s26, 2048  ;;  %p712_p2 = scmp.lt.s32.totalorder %s134_s26, %s134_s26 }
  0x20   : > { %p705_p7 = scmp.ne.s32.totalorder %s134_s26, %s704_s12  ;;  %p713_p6 = scmp.lt.s32.totalorder %s704_s12, %s704_s12 }
  0x22   : > { %p707_p9 = pnand %p705_p7, %p693_p12  ;;  %p714_p4 = por %p713_p6, %p712_p2 }
  0x24   : > { %p708_p1 = pneg %p707_p9 }
  0x26   : > { %p715_p8 = pnand %p714_p4, %p708_p1 }
  0x28   : > { %718 = shalt.err (!%p715_p8)
}
  0x29   : > { %s822_s13 = smov 128   ;;  %s823_s14 = smov 8  }
  0x2a   : > { %641 = dma.hbm_to_vmem [thread:$0]  (!%p904_p10), %s1077_s2, 2048, %s134_s26, [#allocation8], %s822_s13, %s822_s13, %s823_s14  }
  0x2b   : > { %p27_p1 = scmp.eq.s32.totalorder %s26_s30, 0  ;;  %p36_p2 = scmp.ne.s32.totalorder %s815_s19, %s811_s18 }
  0x2c   : > { %p37_p4 = scmp.eq.s32.totalorder %s819_s20, 0  ;;  %p651_p6 = scmp.lt.s32.totalorder %s819_s20, 4 }
  0x2d   : > { %s938_s21 = scalar_select %p27_p1, %s815_s19, %s29_s29  }
  0x2e   : > { %p38_p8 = por %p37_p4, %p36_p2  ;;  %p1087_p11 = scmp.eq.s32.totalorder %s877_s0, 3 }
  0x2f   : > { %s150_s27 = sand.u32 1, %s815_s19   ;;  %s522_s5 = sshll.u32 %s819_s20, 9 }
  0x30   : > { %p942_p12 = por %p1087_p11, %p36_p2  ;;  %s508_s6 = sshll.u32 %s150_s27, 5 }
  0x31   : > { %s951_s9 = scalar_lea.hbm %s1076_s1, %s522_s5  ;;  %s154_s26 = scalar_lea.vmem [#allocation4], %s508_s6 }
  0x32   : > { %s161_s29 = sshll.u32 %s154_s26, 4  ;;  %p953_p10 = pnand %p651_p6, %p38_p8  ;;  %s957_s29 = int_to_ptr.vmem [resolvable:$true] %s161_s29 }
  0x33   : > { %s959_s10 = scalar_lea.sflag [#allocation5], %s150_s27  ;;  %s719_s11 = scalar_lea.hbm %s951_s9, 512 }
  0x34   : > { %p720_p13 = scmp.ne.s32.totalorder %s951_s9, %s719_s11  ;;  %p721_p0 = pneg %p953_p10 }
  0x35   : > { %s724_s16 = scalar_lea.hbm %s1076_s1, 2048  ;;  %p725_p7 = scmp.lt.u32.totalorder %s951_s9, %s1076_s1 }
  0x36   : > { %p722_p3 = pnand %p721_p0, %p720_p13  ;;  %p726_p9 = scmp.lt.u32.totalorder %s724_s16, %s719_s11 }
  0x37   : > { %p728_p2 = scmp.lt.u32.totalorder %s719_s11, %s951_s9 }
  0x38   : > { %p723_p5 = pneg %p722_p3  ;;  %p727_p1 = por %p726_p9, %p725_p7 }
  0x3a   : > { %p729_p4 = por %p728_p2, %p727_p1 }
  0x3c   : > { %p730_p6 = pnand %p729_p4, %p723_p5 }
  0x3e   : > { %733 = shalt.err (!%p730_p6)
}
  0x3f   : > { %s734_s27 = scalar_lea.vmem %s957_s29, 512  ;;  %s824_s7 = smov [#allocation4]  }
  0x40   : > { %p735_p8 = scmp.ne.s32.totalorder %s957_s29, %s734_s27  ;;  %s739_s8 = sshll.u32 %s824_s7, 4  ;;  %s740_s8 = int_to_ptr.vmem [resolvable:$false] %s739_s8 }
  0x41   : > { %s741_s26 = scalar_lea.vmem %s740_s8, 1024  ;;  %p742_p3 = scmp.lt.s32.totalorder %s957_s29, %s740_s8 }
  0x42   : > { %p737_p11 = pnand %p735_p8, %p721_p0  ;;  %p743_p7 = scmp.lt.s32.totalorder %s741_s26, %s734_s27 }
  0x44   : > { %p738_p13 = pneg %p737_p11  ;;  %p744_p9 = por %p743_p7, %p742_p3 }
  0x46   : > { %p745_p1 = pnand %p744_p9, %p738_p13 }
  0x48   : > { %748 = shalt.err (!%p745_p1)
}
  0x49   : > { %645 = dma.hbm_to_vmem [thread:$0]  (!%p953_p10), %s951_s9, 512, %s957_s29, %s959_s10, %s822_s13, %s822_s13, %s823_s14  }
  0x4a   : > { %p1090_p0 = scmp.ne.s32.totalorder %s1085_s24, 0 }
  0x4b   : > { %s993_s11 = sand.u32 (!%p1090_p0), 1, %s811_s18   ;;  %p1091_p5 = scmp.ne.s32.totalorder (!%p1090_p0), %s1083_s22, 0 }
  0x4c   : > { %173 = sbr.rel (%p1090_p0) target bundleno = 355 (0x163), region = 32  ;;  %s512_s12 = sshll.u32 (!%p1090_p0), %s993_s11, 5 }
  0x4d   : > { %s176_s15 = scalar_lea.sflag (!%p1090_p0), [#allocation5], %s993_s11  ;;  %s999_s30 = scalar_lea.vmem (!%p1090_p0), [#allocation4], %s512_s12 }
  0x53   : > { %794 = dma.done.wait (%p1091_p5), %s176_s15, 512  }
  0x54   : > { %796 = vsyncadd (%p1091_p5), %s176_s15, 4294966784  ;;  %p1092_p10 = scmp.eq.s32.totalorder %s877_s0, 0 }
  0x56   : > { %798 = dma.done.wait (%p1092_p10), [#allocation8], 2048   ;;  %p1093_p2 = pmov %p1092_p10 }
  0x57   : > { %v212_v0 = vld [vmem:[#allocation7] sm:$0xff]  ;;  %v213_v1 = vld [vmem:[#allocation7 + $0x8] sm:$0xff]  ;;  %v214_v2 = vld [vmem:[#allocation7 + $0x10] sm:$0xff]  ;;  %v321_v28 = vlaneseq  ;;  %s516_s22 = sshll.u32 %s877_s0, 5  ;;  %s320_s24 = sld [smem:[#allocation3]] }
  0x58   : > { %800 = vsyncadd (%p1093_p2), [#allocation8], 4294965248  ;;  %v582_v3 = vpack.c.bf16 %v213_v1, %v212_v0  ;;  %v215_v4 = vld [vmem:[#allocation7 + $0x18] sm:$0xff]  ;;  %v216_v6 = vld [vmem:[#allocation7 + $0x20] sm:$0xff]  ;;  %v329_v32 = vstv %s516_s22  ;;  %s1019_s9 = scalar_lea.vmem [#allocation9], %s512_s12  ;;  %s523_s10 = sshll.u32 %s877_s0, 9 }
  0x59   : > { %v586_v5 = vpack.c.bf16 %v215_v4, %v214_v2  ;;  %v217_v7 = vld [vmem:[#allocation7 + $0x28] sm:$0xff]  ;;  %v208_v9 = vld [vmem:[%s999_s30] sm:$0xff]  ;;  %v210_v10 = vld [vmem:[%s999_s30 + $0x10] sm:$0xff]  ;;  %v322_v29 = vshrl.u32 %v321_v28, 7  ;;  %v327_v38 = vand.u32 127, %v321_v28  ;;  %s421_s29 = sshll.u32 %s1019_s9, 4  ;;  %s1028_s5 = scalar_lea.hbm %s1079_s4, %s523_s10  ;;  %s1023_s29 = int_to_ptr.vmem [resolvable:$true] %s421_s29 }
  0x5a   : > { %583 = vmatprep.subr.bf16.mxu0 %v582_v3  ;;  %614 = vmatprep.subr.bf16.mxu1 %v582_v3  ;;  %v590_v8 = vpack.c.bf16 %v217_v7, %v216_v6  ;;  %v218_v11 = vld [vmem:[#allocation7 + $0x30] sm:$0xff]  ;;  %v219_v12 = vld [vmem:[#allocation7 + $0x38] sm:$0xff]  ;;  %v220_v14 = vld [vmem:[#allocation7 + $0x40] sm:$0xff]  ;;  %s408_s6 = scalar_lea.sflag [#allocation6], %s993_s11  ;;  %s749_s27 = scalar_lea.vmem %s1023_s29, 512 }
  0x5b   : > { %585 = vmatpush3.bf16.msra.mxu0 %v582_v3  ;;  %622 = vmatpush3.bf16.msra.mxu1 %v582_v3  ;;  %v594_v13 = vpack.c.bf16 %v219_v12, %v218_v11  ;;  %v221_v15 = vld [vmem:[#allocation7 + $0x48] sm:$0xff]  ;;  %v222_v17 = vld [vmem:[#allocation7 + $0x50] sm:$0xff]  ;;  %v223_v18 = vld [vmem:[#allocation7 + $0x58] sm:$0xff]  ;;  %v323_v30 = vadd.s32 8, %v322_v29  ;;  %v325_v31 = vadd.s32 24, %v322_v29  ;;  %v324_v33 = vadd.s32 16, %v322_v29  ;;  %p750_p4 = scmp.ne.s32.totalorder %s1023_s29, %s749_s27 }
  0x5c   : > { %587 = vmatprep.subr.bf16.mxu0 %v586_v5  ;;  %615 = vmatprep.subr.bf16.mxu1 %v586_v5  ;;  %v598_v16 = vpack.c.bf16 %v221_v15, %v220_v14  ;;  %v602_v19 = vpack.c.bf16 %v223_v18, %v222_v17  ;;  %v224_v20 = vld [vmem:[#allocation7 + $0x60] sm:$0xff]  ;;  %v225_v21 = vld [vmem:[#allocation7 + $0x68] sm:$0xff]  ;;  %v226_v23 = vld [vmem:[#allocation7 + $0x70] sm:$0xff]  ;;  %v330_v36 = vadd.s32 %v329_v32, %v322_v29  ;;  %s825_s7 = smov [#allocation9]  }
  0x5d   : > { %576 = vmatprep.mubr.f32.mxu0 %v208_v9  ;;  %579 = vmatprep.mubr.f32.mxu1 %v210_v10  ;;  %v606_v22 = vpack.c.bf16 %v225_v21, %v224_v20  ;;  %v227_v24 = vld [vmem:[#allocation7 + $0x78] sm:$0xff]  ;;  %v209_v26 = vld [vmem:[%s999_s30 + $0x8] sm:$0xff]  ;;  %v331_v34 = vadd.s32 %v329_v32, %v323_v30  ;;  %v333_v35 = vadd.s32 %v329_v32, %v325_v31  ;;  %v342_v45 = vstv %s320_s24  ;;  %p751_p6 = pnand %p750_p4, %p942_p12  ;;  %s753_s8 = sshll.u32 %s825_s7, 4  ;;  %s754_s8 = int_to_ptr.vmem [resolvable:$false] %s753_s8 }
  0x5e   : > { %v610_v25 = vpack.c.bf16 %v227_v24, %v226_v23  ;;  %v211_v27 = vld [vmem:[%s999_s30 + $0x18] sm:$0xff]  ;;  %v332_v37 = vadd.s32 %v329_v32, %v324_v33  ;;  %v334_v41 = vmul.u32 128, %v330_v36  ;;  %s755_s26 = scalar_lea.vmem %s754_s8, 1024  ;;  %p756_p11 = scmp.lt.s32.totalorder %s1023_s29, %s754_s8 }
  0x5f   : > { %589 = vmatpush3.bf16.msra.mxu0 %v586_v5  ;;  %623 = vmatpush3.bf16.msra.mxu1 %v586_v5  ;;  %v335_v39 = vmul.u32 128, %v331_v34  ;;  %v337_v40 = vmul.u32 128, %v333_v35  ;;  %p752_p8 = pneg %p751_p6  ;;  %p757_p13 = scmp.lt.s32.totalorder %s755_s26, %s749_s27 }
  0x60   : > { %591 = vmatprep.subr.bf16.mxu0 %v590_v8  ;;  %616 = vmatprep.subr.bf16.mxu1 %v590_v8  ;;  %v336_v42 = vmul.u32 128, %v332_v37  ;;  %v338_v46 = vadd.s32 %v334_v41, %v327_v38 }
  0x61   : > { %v339_v43 = vadd.s32 %v335_v39, %v327_v38  ;;  %v341_v44 = vadd.s32 %v337_v40, %v327_v38  ;;  %p758_p3 = por %p757_p13, %p756_p11 }
  0x62   : > { %v340_v47 = vadd.s32 %v336_v42, %v327_v38  ;;  %v343_v50 = vadd.s32 %v342_v45, %v338_v46 }
  0x63   : > { %593 = vmatpush3.bf16.msra.mxu0 %v590_v8  ;;  %624 = vmatpush3.bf16.msra.mxu1 %v590_v8  ;;  %v344_v48 = vadd.s32 %v342_v45, %v339_v43  ;;  %v346_v49 = vadd.s32 %v342_v45, %v341_v44  ;;  %p759_p7 = pnand %p758_p3, %p752_p8 }
  0x64   : > { %595 = vmatprep.subr.bf16.mxu0 %v594_v13  ;;  %617 = vmatprep.subr.bf16.mxu1 %v594_v13  ;;  %v345_v51 = vadd.s32 %v342_v45, %v340_v47  ;;  %v347_v54 = vshrl.u32 %v343_v50, 16 }
  0x65   : > { %v348_v52 = vshrl.u32 %v344_v48, 16  ;;  %v350_v53 = vshrl.u32 %v346_v49, 16 }
  0x66   : > { %v349_v55 = vshrl.u32 %v345_v51, 16  ;;  %v351_v58 = vxor.u32 %v347_v54, %v343_v50 }
  0x67   : > { %597 = vmatpush3.bf16.msra.mxu0 %v594_v13  ;;  %625 = vmatpush3.bf16.msra.mxu1 %v594_v13  ;;  %v352_v56 = vxor.u32 %v348_v52, %v344_v48  ;;  %v354_v57 = vxor.u32 %v350_v53, %v346_v49 }
  0x68   : > { %599 = vmatprep.subr.bf16.mxu0 %v598_v16  ;;  %618 = vmatprep.subr.bf16.mxu1 %v598_v16  ;;  %v353_v59 = vxor.u32 %v349_v55, %v345_v51  ;;  %v355_v62 = vmul.u32 2146121005, %v351_v58 }
  0x69   : > { %v356_v60 = vmul.u32 2146121005, %v352_v56  ;;  %v358_v61 = vmul.u32 2146121005, %v354_v57 }
  0x6a   : > { %v357_v63 = vmul.u32 2146121005, %v353_v59  ;;  %v359_v2 = vshrl.u32 %v355_v62, 15 }
  0x6b   : > { %601 = vmatpush3.bf16.msra.mxu0 %v598_v16  ;;  %626 = vmatpush3.bf16.msra.mxu1 %v598_v16  ;;  %v360_v0 = vshrl.u32 %v356_v60, 15  ;;  %v362_v1 = vshrl.u32 %v358_v61, 15 }
  0x6c   : > { %603 = vmatprep.subr.bf16.mxu0 %v602_v19  ;;  %619 = vmatprep.subr.bf16.mxu1 %v602_v19  ;;  %v361_v3 = vshrl.u32 %v357_v63, 15  ;;  %v363_v6 = vxor.u32 %v359_v2, %v355_v62 }
  0x6d   : > { %v364_v4 = vxor.u32 %v360_v0, %v356_v60  ;;  %v366_v5 = vxor.u32 %v362_v1, %v358_v61 }
  0x6e   : > { %v365_v7 = vxor.u32 %v361_v3, %v357_v63  ;;  %v367_v10 = vmul.u32 2221713035, %v363_v6 }
  0x6f   : > { %605 = vmatpush3.bf16.msra.mxu0 %v602_v19  ;;  %627 = vmatpush3.bf16.msra.mxu1 %v602_v19  ;;  %v368_v8 = vmul.u32 2221713035, %v364_v4  ;;  %v370_v9 = vmul.u32 2221713035, %v366_v5 }
  0x70   : > { %607 = vmatprep.subr.bf16.mxu0 %v606_v22  ;;  %620 = vmatprep.subr.bf16.mxu1 %v606_v22  ;;  %v369_v11 = vmul.u32 2221713035, %v365_v7  ;;  %v371_v14 = vshrl.u32 %v367_v10, 16 }
  0x71   : > { %v372_v12 = vshrl.u32 %v368_v8, 16  ;;  %v374_v13 = vshrl.u32 %v370_v9, 16 }
  0x72   : > { %v373_v15 = vshrl.u32 %v369_v11, 16  ;;  %v375_v18 = vxor.u32 %v371_v14, %v367_v10 }
  0x73   : > { %609 = vmatpush3.bf16.msra.mxu0 %v606_v22  ;;  %628 = vmatpush3.bf16.msra.mxu1 %v606_v22  ;;  %v376_v16 = vxor.u32 %v372_v12, %v368_v8  ;;  %v378_v17 = vxor.u32 %v374_v13, %v370_v9 }
  0x74   : > { %611 = vmatprep.subr.bf16.mxu0 %v610_v25  ;;  %621 = vmatprep.subr.bf16.mxu1 %v610_v25  ;;  %v377_v19 = vxor.u32 %v373_v15, %v369_v11  ;;  %v379_v22 = vshrl.u32 %v375_v18, 8 }
  0x75   : > { %v380_v20 = vshrl.u32 %v376_v16, 8  ;;  %v382_v21 = vshrl.u32 %v378_v17, 8 }
  0x76   : > { %v381_v23 = vshrl.u32 %v377_v19, 8 }
  0x77   : > { %613 = vmatpush3.bf16.msra.mxu0 %v610_v25  ;;  %629 = vmatpush3.bf16.msra.mxu1 %v610_v25  ;;  %v384_v24 = vcvt.s32.f32 %v380_v20  ;;  %v386_v25 = vcvt.s32.f32 %v382_v21 }
  0x78   : > { %v385_v28 = vcvt.s32.f32 %v381_v23 }
  0x79   : > { %v388_v32 = vmul.f32 5.9604645e-08, %v384_v24  ;;  %v390_v34 = vmul.f32 5.9604645e-08, %v386_v25 }
  0x7a   : > { %577 = vmatmul.mubr.f32.vlgmr.msra.gmra.mrb[0].mxu0 %v209_v26  ;;  %580 = vmatmul.mubr.f32.vlgmr.msra.gmra.mrb[0].mxu1 %v211_v27  ;;  %v515_v26 = vld [vmem:[%s1078_s3] ss:$0 sm:$0xff]  ;;  %v383_v27 = vcvt.s32.f32 %v379_v22  ;;  %v389_v40 = vmul.f32 5.9604645e-08, %v385_v28 }
  0x7c   : > { %v387_v38 = vmul.f32 5.9604645e-08, %v383_v27 }
 0x14d   : > { %v578_v29 = vpop.f32.mrb[0].mxu0  ;;  %v581_v30 = vpop.f32.mrb[0].mxu1 }
 0x14e   : > { %v307_v31 = vadd.f32 %v578_v29, %v515_v26  ;;  %v317_v33 = vadd.f32 %v581_v30, %v515_v26  ;;  %v301_v35 = vpop.f32.mrb[1].mxu0  ;;  %v311_v36 = vpop.f32.mrb[1].mxu1 }
 0x14f   : > { %v302_v37 = vadd.f32 %v515_v26, %v301_v35  ;;  %v312_v39 = vadd.f32 %v515_v26, %v311_v36 }
 0x150   : > { %vm392_vm0 = vcmp.gt.f32.partialorder %v307_v31, 0.5  ;;  %v396_v41 = vadd.f32 10.0, %v307_v31  ;;  %vm394_vm1 = vcmp.gt.f32.partialorder %v317_v33, 0.5  ;;  %v398_v42 = vadd.f32 10.0, %v317_v33 }
 0x151   : > { %vm391_vm2 = vcmp.gt.f32.partialorder %v302_v37, 0.5  ;;  %v395_v43 = vadd.f32 10.0, %v302_v37  ;;  %vm393_vm3 = vcmp.gt.f32.partialorder %v312_v39, 0.5  ;;  %v397_v44 = vadd.f32 10.0, %v312_v39 }
 0x152   : > { %v400_v45 = vsel %vm392_vm0, %v396_v41, %v388_v32  ;;  %v402_v46 = vsel %vm394_vm1, %v398_v42, %v390_v34 }
 0x153   : > { %404 = vst [vmem:[%s1019_s9 + $0x8] sm:$0xff] %v400_v45  ;;  %406 = vst [vmem:[%s1019_s9 + $0x18] sm:$0xff] %v402_v46  ;;  %v399_v47 = vsel %vm391_vm2, %v395_v43, %v387_v38  ;;  %v401_v48 = vsel %vm393_vm3, %v397_v44, %v389_v40 }
 0x154   : > { %403 = vst [vmem:[%s1019_s9] sm:$0xff] %v399_v47  ;;  %405 = vst [vmem:[%s1019_s9 + $0x10] sm:$0xff] %v401_v48 }
 0x155   : > { %762 = shalt.err (!%p759_p7)
}
 0x156   : > { %s763_s12 = scalar_lea.hbm %s1028_s5, 512  ;;  %s767_s22 = scalar_lea.hbm %s1079_s4, 2048 }
 0x157   : > { %p764_p9 = scmp.ne.s32.totalorder %s1028_s5, %s763_s12  ;;  %p768_p5 = scmp.lt.u32.totalorder %s1028_s5, %s1079_s4 }
 0x158   : > { %p769_p10 = scmp.lt.u32.totalorder %s767_s22, %s763_s12  ;;  %p771_p4 = scmp.lt.u32.totalorder %s763_s12, %s1028_s5 }
 0x159   : > { %p765_p1 = pnand %p764_p9, %p942_p12 }
 0x15a   : > { %p770_p2 = por %p769_p10, %p768_p5 }
 0x15b   : > { %p766_p0 = pneg %p765_p1 }
 0x15c   : > { %p772_p6 = por %p771_p4, %p770_p2 }
 0x15e   : > { %p773_p8 = pnand %p772_p6, %p766_p0 }
 0x160   : > { %776 = shalt.err (!%p773_p8)
}
 0x161   : > { %s826_s14 = smov 128   ;;  %s827_s9 = smov 8  }
 0x162   : > { %636 = dma.vmem_to_hbm [thread:$0]  (%p942_p12), %s1023_s29, 512, %s1028_s5, %s408_s6, %s826_s14, %s826_s14, %s827_s9  }
 0x163 PF: > { %p653_p11 = scmp.ge.s32.totalorder %s819_s20, 2  ;;  %s436_s10 = sand.u32 1, %s807_s17  }
 0x164   : > { %p1094_p13 = scmp.ne.s32.totalorder %s1084_s23, 0  ;;  %s437_s0 = scalar_lea.sflag [#allocation6], %s436_s10 }
 0x166   : > { %p647_p3 = pnand %p653_p11, %p1094_p13 }
 0x168   : > { %802 = dma.done.wait (!%p647_p3), %s437_s0, 512  }
 0x169   : > { %804 = vsyncadd (!%p647_p3), %s437_s0, 4294966784  ;;  %p19_p7 = scmp.ge.s32.totalorder %s909_s28, 6   ;;  %s1095_s17 = smov %s811_s18 }
 0x16a   : > { %s1096_s18 = smov %s815_s19  ;;  %s1097_s19 = smov %s938_s21 }
 0x16b   : > { %s1098_s20 = smov %s909_s28  ;;  %21 = sbr.rel (!%p19_p7) target bundleno = 8 (0x8), region = 81 }
 0x172   :  { %442 = vsyncpa [#allocation5], 1 }
 0x173   :  { %444 = vsyncpa [#allocation5 + $0x1], 1 }
 0x174   :  { %445 = vsyncpa [#allocation8], 1 }
 0x175   :  { %446 = vsyncpa [#allocation6], 1 }
 0x176   :  { %448 = vsyncpa [#allocation6 + $0x1], 1 }

</bundles_post_ra>
